<compile_context>
chip_gen: v6e
topology: v6e:2x2x1
jax: 0.10.0
libtpu: 0.0.40
codegen_flags: <defaults>
</compile_context>

<pallas_src>
import jax
import jax.numpy as jnp
from jax.experimental import pallas as pl
from jax.experimental.pallas import tpu as pltpu  # noqa: F401  (kept for TPU-specific tuning hooks)


def _make_exercise_kernel(elem_add: int, elem_multiply: int):
    """Bake the two integer hyper-parameters in as VPU immediates."""

    def kernel(x_ref, t_ref, out_ref):
        # x_ref/t_ref: (rows, cols) VMEM tiles; out_ref: (3, rows, cols) VMEM tile.
        p2 = x_ref[...] + t_ref[...]       # problem2: x + mytensor
        p3 = p2 + elem_add                 # problem3: + elem_add (weak-typed const)
        p4 = p3 * elem_multiply            # problem4: * elem_multiply
        out_ref[0] = p2
        out_ref[1] = p3
        out_ref[2] = p4

    return kernel


def exercise_model_forward(x, mytensor, elem_add: int, elem_multiply: int):
    assert x.shape == mytensor.shape, "input size must match self.tensor size."
    orig_shape = x.shape
    n = x.size

    # Lane-dense 2-D slab: sublane dim = 8, lane dim = n // 8 (multiple of 128).
    assert n % (8 * 128) == 0, "demo shapes chosen so they flatten to (8, k*128)"
    rows, cols = 8, n // 8
    x2 = x.reshape(rows, cols)
    t2 = mytensor.reshape(rows, cols)

    kernel = _make_exercise_kernel(int(elem_add), int(elem_multiply))

    in_spec = pl.BlockSpec((rows, cols), lambda: (0, 0))
    out_spec = pl.BlockSpec((3, rows, cols), lambda: (0, 0, 0))

    stacked = pl.pallas_call(
        kernel,
        out_shape=jax.ShapeDtypeStruct((3, rows, cols), x.dtype),
        grid=(),
        in_specs=[in_spec, in_spec],
        out_specs=out_spec,
    )(x2, t2)

    p2 = stacked[0].reshape(orig_shape)
    p3 = stacked[1].reshape(orig_shape)
    p4 = stacked[2].reshape(orig_shape)
    return p2, p3, p4


if __name__ == "__main__":
    key = jax.random.PRNGKey(0)
    k_x, k_t = jax.random.split(key)

    shape = (2, 4, 16, 16)          # small NCHW-style shape
    x = jax.random.normal(k_x, shape, dtype=jnp.float32)
    mytensor = jax.random.normal(k_t, shape, dtype=jnp.float32)
    elem_add = 3
    elem_multiply = 2

    p2, p3, p4 = exercise_model_forward(x, mytensor, elem_add, elem_multiply)
    jax.block_until_ready((p2, p3, p4))

    # Correctness check against plain-JAX reference of the PyTorch semantics.
    ref2 = x + mytensor
    ref3 = ref2 + elem_add
    ref4 = ref3 * elem_multiply
    assert jnp.allclose(p2, ref2), "problem2_out mismatch"
    assert jnp.allclose(p3, ref3), "problem3_out mismatch"
    assert jnp.allclose(p4, ref4), "problem4_out mismatch"

    print("KERNEL_OK")
</pallas_src>

<mosaic_0001>
module attributes {stable_mosaic.version = 11 : i64} {
  func.func @kernel(%arg0: memref<8x256xf32, #tpu.memory_space<vmem>>, %arg1: memref<8x256xf32, #tpu.memory_space<vmem>>, %arg2: memref<3x8x256xf32, #tpu.memory_space<vmem>>) attributes {dimension_semantics = [], scalar_prefetch = 0 : i64, scratch_operands = 0 : i64, tpu.core_type = #tpu.core_type<tc>} {
    %c0 = arith.constant 0 : index
    %c0_0 = arith.constant 0 : index
    %0 = vector.load %arg0[%c0, %c0_0] : memref<8x256xf32, #tpu.memory_space<vmem>>, vector<8x256xf32>
    %c0_1 = arith.constant 0 : index
    %c0_2 = arith.constant 0 : index
    %1 = vector.load %arg1[%c0_1, %c0_2] : memref<8x256xf32, #tpu.memory_space<vmem>>, vector<8x256xf32>
    %2 = arith.addf %0, %1 : vector<8x256xf32>
    %cst = arith.constant 3.000000e+00 : f32
    %3 = vector.broadcast %cst : f32 to vector<8x256xf32>
    %4 = arith.addf %2, %3 : vector<8x256xf32>
    %cst_3 = arith.constant 2.000000e+00 : f32
    %5 = vector.broadcast %cst_3 : f32 to vector<8x256xf32>
    %6 = arith.mulf %4, %5 : vector<8x256xf32>
    %c0_4 = arith.constant 0 : index
    %c0_5 = arith.constant 0 : index
    %c0_6 = arith.constant 0 : index
    %7 = vector.load %arg2[%c0_4, %c0_5, %c0_6] : memref<3x8x256xf32, #tpu.memory_space<vmem>>, vector<1x8x256xf32>
    %8 = vector.shape_cast %7 : vector<1x8x256xf32> to vector<8x256xf32>
    %9 = vector.shape_cast %2 : vector<8x256xf32> to vector<1x8x256xf32>
    tpu.vector_store %arg2[%c0_4, %c0_5, %c0_6], %9 {strides = array<i32>} : memref<3x8x256xf32, #tpu.memory_space<vmem>>, vector<1x8x256xf32>,
    %c1 = arith.constant 1 : index
    %c0_7 = arith.constant 0 : index
    %c0_8 = arith.constant 0 : index
    %10 = vector.load %arg2[%c1, %c0_7, %c0_8] : memref<3x8x256xf32, #tpu.memory_space<vmem>>, vector<1x8x256xf32>
    %11 = vector.shape_cast %10 : vector<1x8x256xf32> to vector<8x256xf32>
    %12 = vector.shape_cast %4 : vector<8x256xf32> to vector<1x8x256xf32>
    tpu.vector_store %arg2[%c1, %c0_7, %c0_8], %12 {strides = array<i32>} : memref<3x8x256xf32, #tpu.memory_space<vmem>>, vector<1x8x256xf32>,
    %c2 = arith.constant 2 : index
    %c0_9 = arith.constant 0 : index
    %c0_10 = arith.constant 0 : index
    %13 = vector.load %arg2[%c2, %c0_9, %c0_10] : memref<3x8x256xf32, #tpu.memory_space<vmem>>, vector<1x8x256xf32>
    %14 = vector.shape_cast %13 : vector<1x8x256xf32> to vector<8x256xf32>
    %15 = vector.shape_cast %6 : vector<8x256xf32> to vector<1x8x256xf32>
    tpu.vector_store %arg2[%c2, %c0_9, %c0_10], %15 {strides = array<i32>} : memref<3x8x256xf32, #tpu.memory_space<vmem>>, vector<1x8x256xf32>,
    return
  }
}

</mosaic_0001>

<bundles_post_ra>
// kernel: tpu_custom_call.1
= control target key start
LH: loop header
LB: loop body
LE: loop exit
PB: predicated region body
PF: predicated region fallthrough
CT: control target
= control target key end

     0   :  { %7 = vsyncpa [#allocation3], 0  ;;  %s172_s0 = inlined_call_operand.hbm [shape: f32[8,256], index: 0, kind: input, shape index: {}]   ;;  %s173_s1 = inlined_call_operand.hbm [shape: f32[8,256], index: 1, kind: input, shape index: {}]   ;;  %s174_s2 = inlined_call_operand.hbm [shape: f32[3,8,256], index: 2, kind: output, shape index: {}]  }
   0x1   :  { %8 = vsyncpa [#allocation6], 0 }
   0x2   :  { %9 = vsyncpa [#allocation4], 0  ;;  %s143_s9 = smov [#allocation2]   ;;  %s144_s11 = smov [#allocation5]  }
   0x3   :  { %s16_s10 = sshll.u32 %s143_s9, 4  ;;  %s26_s12 = sshll.u32 %s144_s11, 4  ;;  %s17_s10 = int_to_ptr.vmem [resolvable:$true] %s16_s10  ;;  %s27_s12 = int_to_ptr.vmem [resolvable:$true] %s26_s12 }
   0x4   :  { %s85_s13 = scalar_lea.vmem %s17_s10, 256  ;;  %p90_p1 = scmp.lt.s32.totalorder %s17_s10, %s17_s10 }
   0x5   :  { %p86_p0 = scmp.ne.s32.totalorder %s17_s10, %s85_s13  ;;  %p91_p2 = scmp.lt.s32.totalorder %s85_s13, %s85_s13 }
   0x7   :  { %p92_p3 = por %p91_p2, %p90_p1 }
   0x9   :  { %p93_p4 = pnand %p92_p3, %p86_p0 }
   0xb   :  { %96 = shalt.err (!%p93_p4)
}
   0xc   :  { %19 = dma.hbm_to_vmem [thread:$0]  %s172_s0, 256, %s17_s10, [#allocation3]  }
   0xd   :  { %s105_s16 = scalar_lea.vmem %s27_s12, 256  ;;  %p110_p6 = scmp.lt.s32.totalorder %s27_s12, %s27_s12 }
   0xe   :  { %p106_p5 = scmp.ne.s32.totalorder %s27_s12, %s105_s16  ;;  %p111_p7 = scmp.lt.s32.totalorder %s105_s16, %s105_s16 }
  0x10   :  { %p112_p8 = por %p111_p7, %p110_p6 }
  0x12   :  { %p113_p9 = pnand %p112_p8, %p106_p5 }
  0x14   :  { %116 = shalt.err (!%p113_p9)
}
  0x15   :  { %29 = dma.hbm_to_vmem [thread:$0]  %s173_s1, 256, %s27_s12, [#allocation6]  }
  0x16   :  { %137 = dma.done.wait [#allocation3], 256  }
  0x17   :  { %138 = vsyncadd [#allocation3], 4294967040 }
  0x18   :  { %139 = dma.done.wait [#allocation6], 256  }
  0x19   :  { %140 = vsyncadd [#allocation6], 4294967040  ;;  %v36_v0 = vld [vmem:[#allocation2] sm:$0xff]  ;;  %v38_v1 = vld [vmem:[#allocation5] sm:$0xff]  ;;  %s145_s0 = smov [#allocation7]  }
  0x1a   :  { %v37_v2 = vld [vmem:[#allocation2 + $0x8] sm:$0xff]  ;;  %v40_v3 = vadd.f32 %v38_v1, %v36_v0  ;;  %v39_v4 = vld [vmem:[#allocation5 + $0x8] sm:$0xff]  ;;  %s59_s19 = sshll.u32 %s145_s0, 4  ;;  %s60_s19 = int_to_ptr.vmem [resolvable:$true] %s59_s19 }
  0x1b   :  { %v41_v5 = vadd.f32 %v39_v4, %v37_v2  ;;  %s117_s1 = scalar_lea.vmem %s60_s19, 768  ;;  %p122_p11 = scmp.lt.s32.totalorder %s60_s19, %s60_s19 }
  0x1c   :  { %46 = vst [vmem:[#allocation7] sm:$0xff] %v40_v3  ;;  %v42_v6 = vadd.f32 3.0, %v40_v3  ;;  %p118_p10 = scmp.ne.s32.totalorder %s60_s19, %s117_s1  ;;  %p123_p12 = scmp.lt.s32.totalorder %s117_s1, %s117_s1 }
  0x1d   :  { %47 = vst [vmem:[#allocation7 + $0x8] sm:$0xff] %v41_v5  ;;  %v43_v7 = vadd.f32 3.0, %v41_v5 }
  0x1e   :  { %49 = vst [vmem:[#allocation7 + $0x10] sm:$0xff] %v42_v6  ;;  %v44_v8 = vmul.f32 2.0, %v42_v6  ;;  %p124_p13 = por %p123_p12, %p122_p11 }
  0x1f   :  { %50 = vst [vmem:[#allocation7 + $0x18] sm:$0xff] %v43_v7  ;;  %v45_v9 = vmul.f32 2.0, %v43_v7 }
  0x20   :  { %52 = vst [vmem:[#allocation7 + $0x20] sm:$0xff] %v44_v8  ;;  %p125_p0 = pnand %p124_p13, %p118_p10 }
  0x21   :  { %53 = vst [vmem:[#allocation7 + $0x28] sm:$0xff] %v45_v9 }
  0x22   :  { %128 = shalt.err (!%p125_p0)
}
  0x23   :  { %s146_s20 = smov 256   ;;  %s147_s21 = smov 16  }
  0x24   :  { %65 = dma.vmem_to_hbm [thread:$0]  %s60_s19, 768, %s174_s2, [#allocation4], %s146_s20, %s146_s20, %s147_s21  }
  0x25   :  { %141 = dma.done.wait [#allocation4], 768  }
  0x26   :  { %142 = vsyncadd [#allocation4], 4294966528 }
  0x27   :  { %69 = vsyncpa [#allocation3], 1 }
  0x28   :  { %70 = vsyncpa [#allocation6], 1 }
  0x29   :  { %71 = vsyncpa [#allocation4], 1 }

</bundles_post_ra>
